<compile_context>
chip_gen: v6e
topology: v6e:2x2x1
jax: 0.10.0
libtpu: 0.0.40
codegen_flags: <defaults>
</compile_context>

<pallas_src>
import functools

import jax
import jax.numpy as jnp
from jax import lax
from jax.experimental import pallas as pl
from jax.experimental.pallas import tpu as pltpu


# ------------------------------ kernel ------------------------------------

def attention_kernel(x_ref, wqkv_ref, wout_ref, bout_ref, o_ref,
                     *, seq, heads, dim_head):
    # x_ref: (B*N, D) flattened batch; o_ref: (B*N, D)
    total_rows, D = x_ref.shape
    B = total_rows // seq
    inner = heads * dim_head
    scale = dim_head ** (-0.5)

    x = x_ref[...]                                            # (B*N, D)
    wqkv = wqkv_ref[...]                                      # (D, 3*inner)
    wout = wout_ref[...]                                      # (inner, D)
    bout = bout_ref[...]                                      # (1, D)

    # Single fused QKV projection for the whole batch.
    qkv = jnp.dot(x, wqkv, preferred_element_type=jnp.float32)   # (B*N, 3*inner)

    nt_dims = (((1,), (1,)), ((), ()))     # contract last dim of both (q @ k^T, no .T op)

    for b in range(B):                     # static, tiny B
        r0 = b * seq
        qkv_b = qkv[r0:r0 + seq, :]        # (N, 3*inner)  aligned sublane slice

        acc = None                         # per-batch accumulated output projection
        for h in range(heads):             # static, tiny heads
            c = h * dim_head
            q_h = qkv_b[:, 0 * inner + c: 0 * inner + c + dim_head]   # (N, dh)
            k_h = qkv_b[:, 1 * inner + c: 1 * inner + c + dim_head]   # (N, dh)
            v_h = qkv_b[:, 2 * inner + c: 2 * inner + c + dim_head]   # (N, dh)

            dots = lax.dot_general(q_h, k_h, nt_dims,
                                   preferred_element_type=jnp.float32) * scale  # (N, N)
            dots = dots - jnp.max(dots, axis=-1, keepdims=True)
            e = jnp.exp(dots)
            denom = jnp.sum(e, axis=-1, keepdims=True)
            attn = e * pl.reciprocal(denom, approx=True)                 # EUP divide

            o_h = jnp.dot(attn, v_h, preferred_element_type=jnp.float32)  # (N, dh)
            # Fold this head's output straight through its rows of W_out
            # (out @ W_out == sum_h out_h @ W_out[h*dh:(h+1)*dh]); avoids concat.
            contrib = jnp.dot(o_h, wout[c:c + dim_head, :],
                              preferred_element_type=jnp.float32)          # (N, D)
            acc = contrib if acc is None else acc + contrib

        o_ref[r0:r0 + seq, :] = (acc + bout).astype(o_ref.dtype)


# ------------------------------ wrapper ------------------------------------

def attention_forward(x, centroid_delta, params, *, heads, dim_head):
    # centroid_delta is unused (rel_pe=False); kept for signature parity.
    del centroid_delta
    B, N, D = x.shape
    inner = heads * dim_head

    x2 = x.reshape(B * N, D)               # wrapper-side flatten (free in XLA)
    vmem = pltpu.MemorySpace.VMEM

    out2 = pl.pallas_call(
        functools.partial(attention_kernel, seq=N, heads=heads, dim_head=dim_head),
        out_shape=jax.ShapeDtypeStruct((B * N, D), x.dtype),
        # gridless: single program, every operand is a whole-array VMEM block
        in_specs=[
            pl.BlockSpec(memory_space=vmem),   # x   (B*N, D)
            pl.BlockSpec(memory_space=vmem),   # W_qkv (D, 3*inner)
            pl.BlockSpec(memory_space=vmem),   # W_out (inner, D)
            pl.BlockSpec(memory_space=vmem),   # b_out (1, D)
        ],
        out_specs=pl.BlockSpec(memory_space=vmem),
    )(x2, params["w_qkv"], params["w_out"], params["b_out"])

    return out2.reshape(B, N, D)


# --------------------------- parameter creation -----------------------------

def init_params(key, *, dim, heads, dim_head, dtype=jnp.float32):
    inner = heads * dim_head
    k1, k2, k3 = jax.random.split(key, 3)
    return {
        # stored as (in, out): y = x @ W  (== torch Linear with weight W.T)
        "w_qkv": (dim ** -0.5) * jax.random.normal(k1, (dim, 3 * inner), dtype),
        "w_out": (inner ** -0.5) * jax.random.normal(k2, (inner, dim), dtype),
        "b_out": 0.1 * jax.random.normal(k3, (1, dim), dtype),
    }


# ----------------------------- pure-JAX reference ---------------------------

def _ref_forward(x, params, *, heads, dim_head):
    B, N, D = x.shape
    inner = heads * dim_head
    scale = dim_head ** (-0.5)
    qkv = x @ params["w_qkv"]
    q, k, v = jnp.split(qkv, 3, axis=-1)
    rs = lambda t: t.reshape(B, N, heads, dim_head).transpose(0, 2, 1, 3)
    q, k, v = rs(q), rs(k), rs(v)
    dots = jnp.einsum("bhnd,bhmd->bhnm", q, k) * scale       # pe = 0 (rel_pe=False)
    attn = jax.nn.softmax(dots, axis=-1)
    out = jnp.einsum("bhnm,bhmd->bhnd", attn, v)
    out = out.transpose(0, 2, 1, 3).reshape(B, N, inner)
    return out @ params["w_out"] + params["b_out"]


# ---------------------------------- main ------------------------------------

if __name__ == "__main__":
    B, N = 2, 8            # batch, sequence length
    dim = 32               # model dim
    heads = 4
    dim_head = 8           # inner = 32, project_out = True

    key = jax.random.PRNGKey(0)
    kx, kc, kp = jax.random.split(key, 3)
    x = jax.random.normal(kx, (B, N, dim), jnp.float32)
    # centroid_delta in the PyTorch module is an NCHW conv input (B, 3, N, N); unused here.
    centroid_delta = jax.random.normal(kc, (B, 3, N, N), jnp.float32)

    params = init_params(kp, dim=dim, heads=heads, dim_head=dim_head)

    out = attention_forward(x, centroid_delta, params, heads=heads, dim_head=dim_head)
    out = jax.block_until_ready(out)

    ref = _ref_forward(x, params, heads=heads, dim_head=dim_head)
    assert out.shape == (B, N, dim)
    # tolerance loosened slightly vs pure-f32 because the softmax denominator
    # uses the EUP approximate reciprocal (rel err ~2^-12)
    assert jnp.allclose(out, ref, atol=2e-3, rtol=2e-3), "Pallas output mismatch vs reference"

    print("KERNEL_OK")
</pallas_src>

<mosaic_0001>
module attributes {stable_mosaic.version = 11 : i64} {
  func.func @attention_kernel(%arg0: memref<16x32xf32, #tpu.memory_space<vmem>>, %arg1: memref<32x96xf32, #tpu.memory_space<vmem>>, %arg2: memref<32x32xf32, #tpu.memory_space<vmem>>, %arg3: memref<1x32xf32, #tpu.memory_space<vmem>>, %arg4: memref<16x32xf32, #tpu.memory_space<vmem>>) attributes {dimension_semantics = [], scalar_prefetch = 0 : i64, scratch_operands = 0 : i64, tpu.core_type = #tpu.core_type<tc>} {
    %c0 = arith.constant 0 : index
    %c0_0 = arith.constant 0 : index
    %0 = vector.load %arg0[%c0, %c0_0] : memref<16x32xf32, #tpu.memory_space<vmem>>, vector<16x32xf32>
    %c0_1 = arith.constant 0 : index
    %c0_2 = arith.constant 0 : index
    %1 = vector.load %arg1[%c0_1, %c0_2] : memref<32x96xf32, #tpu.memory_space<vmem>>, vector<32x96xf32>
    %c0_3 = arith.constant 0 : index
    %c0_4 = arith.constant 0 : index
    %2 = vector.load %arg2[%c0_3, %c0_4] : memref<32x32xf32, #tpu.memory_space<vmem>>, vector<32x32xf32>
    %c0_5 = arith.constant 0 : index
    %c0_6 = arith.constant 0 : index
    %3 = vector.load %arg3[%c0_5, %c0_6] : memref<1x32xf32, #tpu.memory_space<vmem>>, vector<1x32xf32>
    %cst = arith.constant dense<0.000000e+00> : vector<16x96xf32>
    %4 = tpu.matmul %0, %1, %cst {dimension_numbers = #tpu.dot_dimension_numbers<[1], [0], [0], [1], [0, 0, 1, 1], [], []>} : vector<16x32xf32>, vector<32x96xf32>, vector<16x96xf32> -> vector<16x96xf32>
    %5 = vector.extract_strided_slice %4 {offsets = [0, 0], sizes = [8, 96], strides = [1, 1]} : vector<16x96xf32> to vector<8x96xf32>
    %6 = vector.extract_strided_slice %5 {offsets = [0, 0], sizes = [8, 8], strides = [1, 1]} : vector<8x96xf32> to vector<8x8xf32>
    %7 = vector.extract_strided_slice %5 {offsets = [0, 32], sizes = [8, 8], strides = [1, 1]} : vector<8x96xf32> to vector<8x8xf32>
    %8 = vector.extract_strided_slice %5 {offsets = [0, 64], sizes = [8, 8], strides = [1, 1]} : vector<8x96xf32> to vector<8x8xf32>
    %cst_7 = arith.constant dense<0.000000e+00> : vector<8x8xf32>
    %9 = tpu.matmul %6, %7, %cst_7 {dimension_numbers = #tpu.dot_dimension_numbers<[1], [1], [0], [0], [0, 0, 1, 0], [], []>} : vector<8x8xf32>, vector<8x8xf32>, vector<8x8xf32> -> vector<8x8xf32>
    %cst_8 = arith.constant 0.353553385 : f32
    %10 = vector.broadcast %cst_8 : f32 to vector<8x8xf32>
    %11 = arith.mulf %9, %10 : vector<8x8xf32>
    %cst_9 = arith.constant dense<0xFF800000> : vector<8xf32>
    %12 = vector.multi_reduction <maximumf>, %11, %cst_9 [1] : vector<8x8xf32> to vector<8xf32>
    %13 = vector.shape_cast %12 : vector<8xf32> to vector<8x1xf32>
    %14 = vector.broadcast %13 : vector<8x1xf32> to vector<8x8xf32>
    %15 = arith.subf %11, %14 : vector<8x8xf32>
    %16 = math.exp %15 : vector<8x8xf32>
    %cst_10 = arith.constant dense<0.000000e+00> : vector<8xf32>
    %17 = vector.multi_reduction <add>, %16, %cst_10 [1] : vector<8x8xf32> to vector<8xf32>
    %18 = vector.shape_cast %17 : vector<8xf32> to vector<8x1xf32>
    %19 = tpu.reciprocal %18 {approx = true} : vector<8x1xf32> -> vector<8x1xf32>
    %20 = vector.broadcast %19 : vector<8x1xf32> to vector<8x8xf32>
    %21 = arith.mulf %16, %20 : vector<8x8xf32>
    %cst_11 = arith.constant dense<0.000000e+00> : vector<8x8xf32>
    %22 = tpu.matmul %21, %8, %cst_11 {dimension_numbers = #tpu.dot_dimension_numbers<[1], [0], [0], [1], [0, 0, 1, 1], [], []>} : vector<8x8xf32>, vector<8x8xf32>, vector<8x8xf32> -> vector<8x8xf32>
    %23 = vector.extract_strided_slice %2 {offsets = [0, 0], sizes = [8, 32], strides = [1, 1]} : vector<32x32xf32> to vector<8x32xf32>
    %cst_12 = arith.constant dense<0.000000e+00> : vector<8x32xf32>
    %24 = tpu.matmul %22, %23, %cst_12 {dimension_numbers = #tpu.dot_dimension_numbers<[1], [0], [0], [1], [0, 0, 1, 1], [], []>} : vector<8x8xf32>, vector<8x32xf32>, vector<8x32xf32> -> vector<8x32xf32>
    %25 = vector.extract_strided_slice %5 {offsets = [0, 8], sizes = [8, 8], strides = [1, 1]} : vector<8x96xf32> to vector<8x8xf32>
    %26 = vector.extract_strided_slice %5 {offsets = [0, 40], sizes = [8, 8], strides = [1, 1]} : vector<8x96xf32> to vector<8x8xf32>
    %27 = vector.extract_strided_slice %5 {offsets = [0, 72], sizes = [8, 8], strides = [1, 1]} : vector<8x96xf32> to vector<8x8xf32>
    %cst_13 = arith.constant dense<0.000000e+00> : vector<8x8xf32>
    %28 = tpu.matmul %25, %26, %cst_13 {dimension_numbers = #tpu.dot_dimension_numbers<[1], [1], [0], [0], [0, 0, 1, 0], [], []>} : vector<8x8xf32>, vector<8x8xf32>, vector<8x8xf32> -> vector<8x8xf32>
    %cst_14 = arith.constant 0.353553385 : f32
    %29 = vector.broadcast %cst_14 : f32 to vector<8x8xf32>
    %30 = arith.mulf %28, %29 : vector<8x8xf32>
    %cst_15 = arith.constant dense<0xFF800000> : vector<8xf32>
    %31 = vector.multi_reduction <maximumf>, %30, %cst_15 [1] : vector<8x8xf32> to vector<8xf32>
    %32 = vector.shape_cast %31 : vector<8xf32> to vector<8x1xf32>
    %33 = vector.broadcast %32 : vector<8x1xf32> to vector<8x8xf32>
    %34 = arith.subf %30, %33 : vector<8x8xf32>
    %35 = math.exp %34 : vector<8x8xf32>
    %cst_16 = arith.constant dense<0.000000e+00> : vector<8xf32>
    %36 = vector.multi_reduction <add>, %35, %cst_16 [1] : vector<8x8xf32> to vector<8xf32>
    %37 = vector.shape_cast %36 : vector<8xf32> to vector<8x1xf32>
    %38 = tpu.reciprocal %37 {approx = true} : vector<8x1xf32> -> vector<8x1xf32>
    %39 = vector.broadcast %38 : vector<8x1xf32> to vector<8x8xf32>
    %40 = arith.mulf %35, %39 : vector<8x8xf32>
    %cst_17 = arith.constant dense<0.000000e+00> : vector<8x8xf32>
    %41 = tpu.matmul %40, %27, %cst_17 {dimension_numbers = #tpu.dot_dimension_numbers<[1], [0], [0], [1], [0, 0, 1, 1], [], []>} : vector<8x8xf32>, vector<8x8xf32>, vector<8x8xf32> -> vector<8x8xf32>
    %42 = vector.extract_strided_slice %2 {offsets = [8, 0], sizes = [8, 32], strides = [1, 1]} : vector<32x32xf32> to vector<8x32xf32>
    %cst_18 = arith.constant dense<0.000000e+00> : vector<8x32xf32>
    %43 = tpu.matmul %41, %42, %cst_18 {dimension_numbers = #tpu.dot_dimension_numbers<[1], [0], [0], [1], [0, 0, 1, 1], [], []>} : vector<8x8xf32>, vector<8x32xf32>, vector<8x32xf32> -> vector<8x32xf32>
    %44 = arith.addf %24, %43 : vector<8x32xf32>
    %45 = vector.extract_strided_slice %5 {offsets = [0, 16], sizes = [8, 8], strides = [1, 1]} : vector<8x96xf32> to vector<8x8xf32>
    %46 = vector.extract_strided_slice %5 {offsets = [0, 48], sizes = [8, 8], strides = [1, 1]} : vector<8x96xf32> to vector<8x8xf32>
    %47 = vector.extract_strided_slice %5 {offsets = [0, 80], sizes = [8, 8], strides = [1, 1]} : vector<8x96xf32> to vector<8x8xf32>
    %cst_19 = arith.constant dense<0.000000e+00> : vector<8x8xf32>
    %48 = tpu.matmul %45, %46, %cst_19 {dimension_numbers = #tpu.dot_dimension_numbers<[1], [1], [0], [0], [0, 0, 1, 0], [], []>} : vector<8x8xf32>, vector<8x8xf32>, vector<8x8xf32> -> vector<8x8xf32>
    %cst_20 = arith.constant 0.353553385 : f32
    %49 = vector.broadcast %cst_20 : f32 to vector<8x8xf32>
    %50 = arith.mulf %48, %49 : vector<8x8xf32>
    %cst_21 = arith.constant dense<0xFF800000> : vector<8xf32>
    %51 = vector.multi_reduction <maximumf>, %50, %cst_21 [1] : vector<8x8xf32> to vector<8xf32>
    %52 = vector.shape_cast %51 : vector<8xf32> to vector<8x1xf32>
    %53 = vector.broadcast %52 : vector<8x1xf32> to vector<8x8xf32>
    %54 = arith.subf %50, %53 : vector<8x8xf32>
    %55 = math.exp %54 : vector<8x8xf32>
    %cst_22 = arith.constant dense<0.000000e+00> : vector<8xf32>
    %56 = vector.multi_reduction <add>, %55, %cst_22 [1] : vector<8x8xf32> to vector<8xf32>
    %57 = vector.shape_cast %56 : vector<8xf32> to vector<8x1xf32>
    %58 = tpu.reciprocal %57 {approx = true} : vector<8x1xf32> -> vector<8x1xf32>
    %59 = vector.broadcast %58 : vector<8x1xf32> to vector<8x8xf32>
    %60 = arith.mulf %55, %59 : vector<8x8xf32>
    %cst_23 = arith.constant dense<0.000000e+00> : vector<8x8xf32>
    %61 = tpu.matmul %60, %47, %cst_23 {dimension_numbers = #tpu.dot_dimension_numbers<[1], [0], [0], [1], [0, 0, 1, 1], [], []>} : vector<8x8xf32>, vector<8x8xf32>, vector<8x8xf32> -> vector<8x8xf32>
    %62 = vector.extract_strided_slice %2 {offsets = [16, 0], sizes = [8, 32], strides = [1, 1]} : vector<32x32xf32> to vector<8x32xf32>
    %cst_24 = arith.constant dense<0.000000e+00> : vector<8x32xf32>
    %63 = tpu.matmul %61, %62, %cst_24 {dimension_numbers = #tpu.dot_dimension_numbers<[1], [0], [0], [1], [0, 0, 1, 1], [], []>} : vector<8x8xf32>, vector<8x32xf32>, vector<8x32xf32> -> vector<8x32xf32>
    %64 = arith.addf %44, %63 : vector<8x32xf32>
    %65 = vector.extract_strided_slice %5 {offsets = [0, 24], sizes = [8, 8], strides = [1, 1]} : vector<8x96xf32> to vector<8x8xf32>
    %66 = vector.extract_strided_slice %5 {offsets = [0, 56], sizes = [8, 8], strides = [1, 1]} : vector<8x96xf32> to vector<8x8xf32>
    %67 = vector.extract_strided_slice %5 {offsets = [0, 88], sizes = [8, 8], strides = [1, 1]} : vector<8x96xf32> to vector<8x8xf32>
    %cst_25 = arith.constant dense<0.000000e+00> : vector<8x8xf32>
    %68 = tpu.matmul %65, %66, %cst_25 {dimension_numbers = #tpu.dot_dimension_numbers<[1], [1], [0], [0], [0, 0, 1, 0], [], []>} : vector<8x8xf32>, vector<8x8xf32>, vector<8x8xf32> -> vector<8x8xf32>
    %cst_26 = arith.constant 0.353553385 : f32
    %69 = vector.broadcast %cst_26 : f32 to vector<8x8xf32>
    %70 = arith.mulf %68, %69 : vector<8x8xf32>
    %cst_27 = arith.constant dense<0xFF800000> : vector<8xf32>
    %71 = vector.multi_reduction <maximumf>, %70, %cst_27 [1] : vector<8x8xf32> to vector<8xf32>
    %72 = vector.shape_cast %71 : vector<8xf32> to vector<8x1xf32>
    %73 = vector.broadcast %72 : vector<8x1xf32> to vector<8x8xf32>
    %74 = arith.subf %70, %73 : vector<8x8xf32>
    %75 = math.exp %74 : vector<8x8xf32>
    %cst_28 = arith.constant dense<0.000000e+00> : vector<8xf32>
    %76 = vector.multi_reduction <add>, %75, %cst_28 [1] : vector<8x8xf32> to vector<8xf32>
    %77 = vector.shape_cast %76 : vector<8xf32> to vector<8x1xf32>
    %78 = tpu.reciprocal %77 {approx = true} : vector<8x1xf32> -> vector<8x1xf32>
    %79 = vector.broadcast %78 : vector<8x1xf32> to vector<8x8xf32>
    %80 = arith.mulf %75, %79 : vector<8x8xf32>
    %cst_29 = arith.constant dense<0.000000e+00> : vector<8x8xf32>
    %81 = tpu.matmul %80, %67, %cst_29 {dimension_numbers = #tpu.dot_dimension_numbers<[1], [0], [0], [1], [0, 0, 1, 1], [], []>} : vector<8x8xf32>, vector<8x8xf32>, vector<8x8xf32> -> vector<8x8xf32>
    %82 = vector.extract_strided_slice %2 {offsets = [24, 0], sizes = [8, 32], strides = [1, 1]} : vector<32x32xf32> to vector<8x32xf32>
    %cst_30 = arith.constant dense<0.000000e+00> : vector<8x32xf32>
    %83 = tpu.matmul %81, %82, %cst_30 {dimension_numbers = #tpu.dot_dimension_numbers<[1], [0], [0], [1], [0, 0, 1, 1], [], []>} : vector<8x8xf32>, vector<8x32xf32>, vector<8x32xf32> -> vector<8x32xf32>
    %84 = arith.addf %64, %83 : vector<8x32xf32>
    %85 = vector.broadcast %3 : vector<1x32xf32> to vector<8x32xf32>
    %86 = arith.addf %84, %85 : vector<8x32xf32>
    %c0_31 = arith.constant 0 : index
    %c0_32 = arith.constant 0 : index
    %87 = vector.load %arg4[%c0_31, %c0_32] : memref<16x32xf32, #tpu.memory_space<vmem>>, vector<8x32xf32>
    tpu.vector_store %arg4[%c0_31, %c0_32], %86 {strides = array<i32>} : memref<16x32xf32, #tpu.memory_space<vmem>>, vector<8x32xf32>,
    %88 = vector.extract_strided_slice %4 {offsets = [8, 0], sizes = [8, 96], strides = [1, 1]} : vector<16x96xf32> to vector<8x96xf32>
    %89 = vector.extract_strided_slice %88 {offsets = [0, 0], sizes = [8, 8], strides = [1, 1]} : vector<8x96xf32> to vector<8x8xf32>
    %90 = vector.extract_strided_slice %88 {offsets = [0, 32], sizes = [8, 8], strides = [1, 1]} : vector<8x96xf32> to vector<8x8xf32>
    %91 = vector.extract_strided_slice %88 {offsets = [0, 64], sizes = [8, 8], strides = [1, 1]} : vector<8x96xf32> to vector<8x8xf32>
    %cst_33 = arith.constant dense<0.000000e+00> : vector<8x8xf32>
    %92 = tpu.matmul %89, %90, %cst_33 {dimension_numbers = #tpu.dot_dimension_numbers<[1], [1], [0], [0], [0, 0, 1, 0], [], []>} : vector<8x8xf32>, vector<8x8xf32>, vector<8x8xf32> -> vector<8x8xf32>
    %cst_34 = arith.constant 0.353553385 : f32
    %93 = vector.broadcast %cst_34 : f32 to vector<8x8xf32>
    %94 = arith.mulf %92, %93 : vector<8x8xf32>
    %cst_35 = arith.constant dense<0xFF800000> : vector<8xf32>
    %95 = vector.multi_reduction <maximumf>, %94, %cst_35 [1] : vector<8x8xf32> to vector<8xf32>
    %96 = vector.shape_cast %95 : vector<8xf32> to vector<8x1xf32>
    %97 = vector.broadcast %96 : vector<8x1xf32> to vector<8x8xf32>
    %98 = arith.subf %94, %97 : vector<8x8xf32>
    %99 = math.exp %98 : vector<8x8xf32>
    %cst_36 = arith.constant dense<0.000000e+00> : vector<8xf32>
    %100 = vector.multi_reduction <add>, %99, %cst_36 [1] : vector<8x8xf32> to vector<8xf32>
    %101 = vector.shape_cast %100 : vector<8xf32> to vector<8x1xf32>
    %102 = tpu.reciprocal %101 {approx = true} : vector<8x1xf32> -> vector<8x1xf32>
    %103 = vector.broadcast %102 : vector<8x1xf32> to vector<8x8xf32>
    %104 = arith.mulf %99, %103 : vector<8x8xf32>
    %cst_37 = arith.constant dense<0.000000e+00> : vector<8x8xf32>
    %105 = tpu.matmul %104, %91, %cst_37 {dimension_numbers = #tpu.dot_dimension_numbers<[1], [0], [0], [1], [0, 0, 1, 1], [], []>} : vector<8x8xf32>, vector<8x8xf32>, vector<8x8xf32> -> vector<8x8xf32>
    %106 = vector.extract_strided_slice %2 {offsets = [0, 0], sizes = [8, 32], strides = [1, 1]} : vector<32x32xf32> to vector<8x32xf32>
    %cst_38 = arith.constant dense<0.000000e+00> : vector<8x32xf32>
    %107 = tpu.matmul %105, %106, %cst_38 {dimension_numbers = #tpu.dot_dimension_numbers<[1], [0], [0], [1], [0, 0, 1, 1], [], []>} : vector<8x8xf32>, vector<8x32xf32>, vector<8x32xf32> -> vector<8x32xf32>
    %108 = vector.extract_strided_slice %88 {offsets = [0, 8], sizes = [8, 8], strides = [1, 1]} : vector<8x96xf32> to vector<8x8xf32>
    %109 = vector.extract_strided_slice %88 {offsets = [0, 40], sizes = [8, 8], strides = [1, 1]} : vector<8x96xf32> to vector<8x8xf32>
    %110 = vector.extract_strided_slice %88 {offsets = [0, 72], sizes = [8, 8], strides = [1, 1]} : vector<8x96xf32> to vector<8x8xf32>
    %cst_39 = arith.constant dense<0.000000e+00> : vector<8x8xf32>
    %111 = tpu.matmul %108, %109, %cst_39 {dimension_numbers = #tpu.dot_dimension_numbers<[1], [1], [0], [0], [0, 0, 1, 0], [], []>} : vector<8x8xf32>, vector<8x8xf32>, vector<8x8xf32> -> vector<8x8xf32>
    %cst_40 = arith.constant 0.353553385 : f32
    %112 = vector.broadcast %cst_40 : f32 to vector<8x8xf32>
    %113 = arith.mulf %111, %112 : vector<8x8xf32>
    %cst_41 = arith.constant dense<0xFF800000> : vector<8xf32>
    %114 = vector.multi_reduction <maximumf>, %113, %cst_41 [1] : vector<8x8xf32> to vector<8xf32>
    %115 = vector.shape_cast %114 : vector<8xf32> to vector<8x1xf32>
    %116 = vector.broadcast %115 : vector<8x1xf32> to vector<8x8xf32>
    %117 = arith.subf %113, %116 : vector<8x8xf32>
    %118 = math.exp %117 : vector<8x8xf32>
    %cst_42 = arith.constant dense<0.000000e+00> : vector<8xf32>
    %119 = vector.multi_reduction <add>, %118, %cst_42 [1] : vector<8x8xf32> to vector<8xf32>
    %120 = vector.shape_cast %119 : vector<8xf32> to vector<8x1xf32>
    %121 = tpu.reciprocal %120 {approx = true} : vector<8x1xf32> -> vector<8x1xf32>
    %122 = vector.broadcast %121 : vector<8x1xf32> to vector<8x8xf32>
    %123 = arith.mulf %118, %122 : vector<8x8xf32>
    %cst_43 = arith.constant dense<0.000000e+00> : vector<8x8xf32>
    %124 = tpu.matmul %123, %110, %cst_43 {dimension_numbers = #tpu.dot_dimension_numbers<[1], [0], [0], [1], [0, 0, 1, 1], [], []>} : vector<8x8xf32>, vector<8x8xf32>, vector<8x8xf32> -> vector<8x8xf32>
    %125 = vector.extract_strided_slice %2 {offsets = [8, 0], sizes = [8, 32], strides = [1, 1]} : vector<32x32xf32> to vector<8x32xf32>
    %cst_44 = arith.constant dense<0.000000e+00> : vector<8x32xf32>
    %126 = tpu.matmul %124, %125, %cst_44 {dimension_numbers = #tpu.dot_dimension_numbers<[1], [0], [0], [1], [0, 0, 1, 1], [], []>} : vector<8x8xf32>, vector<8x32xf32>, vector<8x32xf32> -> vector<8x32xf32>
    %127 = arith.addf %107, %126 : vector<8x32xf32>
    %128 = vector.extract_strided_slice %88 {offsets = [0, 16], sizes = [8, 8], strides = [1, 1]} : vector<8x96xf32> to vector<8x8xf32>
    %129 = vector.extract_strided_slice %88 {offsets = [0, 48], sizes = [8, 8], strides = [1, 1]} : vector<8x96xf32> to vector<8x8xf32>
    %130 = vector.extract_strided_slice %88 {offsets = [0, 80], sizes = [8, 8], strides = [1, 1]} : vector<8x96xf32> to vector<8x8xf32>
    %cst_45 = arith.constant dense<0.000000e+00> : vector<8x8xf32>
    %131 = tpu.matmul %128, %129, %cst_45 {dimension_numbers = #tpu.dot_dimension_numbers<[1], [1], [0], [0], [0, 0, 1, 0], [], []>} : vector<8x8xf32>, vector<8x8xf32>, vector<8x8xf32> -> vector<8x8xf32>
    %cst_46 = arith.constant 0.353553385 : f32
    %132 = vector.broadcast %cst_46 : f32 to vector<8x8xf32>
    %133 = arith.mulf %131, %132 : vector<8x8xf32>
    %cst_47 = arith.constant dense<0xFF800000> : vector<8xf32>
    %134 = vector.multi_reduction <maximumf>, %133, %cst_47 [1] : vector<8x8xf32> to vector<8xf32>
    %135 = vector.shape_cast %134 : vector<8xf32> to vector<8x1xf32>
    %136 = vector.broadcast %135 : vector<8x1xf32> to vector<8x8xf32>
    %137 = arith.subf %133, %136 : vector<8x8xf32>
    %138 = math.exp %137 : vector<8x8xf32>
    %cst_48 = arith.constant dense<0.000000e+00> : vector<8xf32>
    %139 = vector.multi_reduction <add>, %138, %cst_48 [1] : vector<8x8xf32> to vector<8xf32>
    %140 = vector.shape_cast %139 : vector<8xf32> to vector<8x1xf32>
    %141 = tpu.reciprocal %140 {approx = true} : vector<8x1xf32> -> vector<8x1xf32>
    %142 = vector.broadcast %141 : vector<8x1xf32> to vector<8x8xf32>
    %143 = arith.mulf %138, %142 : vector<8x8xf32>
    %cst_49 = arith.constant dense<0.000000e+00> : vector<8x8xf32>
    %144 = tpu.matmul %143, %130, %cst_49 {dimension_numbers = #tpu.dot_dimension_numbers<[1], [0], [0], [1], [0, 0, 1, 1], [], []>} : vector<8x8xf32>, vector<8x8xf32>, vector<8x8xf32> -> vector<8x8xf32>
    %145 = vector.extract_strided_slice %2 {offsets = [16, 0], sizes = [8, 32], strides = [1, 1]} : vector<32x32xf32> to vector<8x32xf32>
    %cst_50 = arith.constant dense<0.000000e+00> : vector<8x32xf32>
    %146 = tpu.matmul %144, %145, %cst_50 {dimension_numbers = #tpu.dot_dimension_numbers<[1], [0], [0], [1], [0, 0, 1, 1], [], []>} : vector<8x8xf32>, vector<8x32xf32>, vector<8x32xf32> -> vector<8x32xf32>
    %147 = arith.addf %127, %146 : vector<8x32xf32>
    %148 = vector.extract_strided_slice %88 {offsets = [0, 24], sizes = [8, 8], strides = [1, 1]} : vector<8x96xf32> to vector<8x8xf32>
    %149 = vector.extract_strided_slice %88 {offsets = [0, 56], sizes = [8, 8], strides = [1, 1]} : vector<8x96xf32> to vector<8x8xf32>
    %150 = vector.extract_strided_slice %88 {offsets = [0, 88], sizes = [8, 8], strides = [1, 1]} : vector<8x96xf32> to vector<8x8xf32>
    %cst_51 = arith.constant dense<0.000000e+00> : vector<8x8xf32>
    %151 = tpu.matmul %148, %149, %cst_51 {dimension_numbers = #tpu.dot_dimension_numbers<[1], [1], [0], [0], [0, 0, 1, 0], [], []>} : vector<8x8xf32>, vector<8x8xf32>, vector<8x8xf32> -> vector<8x8xf32>
    %cst_52 = arith.constant 0.353553385 : f32
    %152 = vector.broadcast %cst_52 : f32 to vector<8x8xf32>
    %153 = arith.mulf %151, %152 : vector<8x8xf32>
    %cst_53 = arith.constant dense<0xFF800000> : vector<8xf32>
    %154 = vector.multi_reduction <maximumf>, %153, %cst_53 [1] : vector<8x8xf32> to vector<8xf32>
    %155 = vector.shape_cast %154 : vector<8xf32> to vector<8x1xf32>
    %156 = vector.broadcast %155 : vector<8x1xf32> to vector<8x8xf32>
    %157 = arith.subf %153, %156 : vector<8x8xf32>
    %158 = math.exp %157 : vector<8x8xf32>
    %cst_54 = arith.constant dense<0.000000e+00> : vector<8xf32>
    %159 = vector.multi_reduction <add>, %158, %cst_54 [1] : vector<8x8xf32> to vector<8xf32>
    %160 = vector.shape_cast %159 : vector<8xf32> to vector<8x1xf32>
    %161 = tpu.reciprocal %160 {approx = true} : vector<8x1xf32> -> vector<8x1xf32>
    %162 = vector.broadcast %161 : vector<8x1xf32> to vector<8x8xf32>
    %163 = arith.mulf %158, %162 : vector<8x8xf32>
    %cst_55 = arith.constant dense<0.000000e+00> : vector<8x8xf32>
    %164 = tpu.matmul %163, %150, %cst_55 {dimension_numbers = #tpu.dot_dimension_numbers<[1], [0], [0], [1], [0, 0, 1, 1], [], []>} : vector<8x8xf32>, vector<8x8xf32>, vector<8x8xf32> -> vector<8x8xf32>
    %165 = vector.extract_strided_slice %2 {offsets = [24, 0], sizes = [8, 32], strides = [1, 1]} : vector<32x32xf32> to vector<8x32xf32>
    %cst_56 = arith.constant dense<0.000000e+00> : vector<8x32xf32>
    %166 = tpu.matmul %164, %165, %cst_56 {dimension_numbers = #tpu.dot_dimension_numbers<[1], [0], [0], [1], [0, 0, 1, 1], [], []>} : vector<8x8xf32>, vector<8x32xf32>, vector<8x32xf32> -> vector<8x32xf32>
    %167 = arith.addf %147, %166 : vector<8x32xf32>
    %168 = vector.broadcast %3 : vector<1x32xf32> to vector<8x32xf32>
    %169 = arith.addf %167, %168 : vector<8x32xf32>
    %c8 = arith.constant 8 : index
    %c0_57 = arith.constant 0 : index
    %170 = vector.load %arg4[%c8, %c0_57] : memref<16x32xf32, #tpu.memory_space<vmem>>, vector<8x32xf32>
    tpu.vector_store %arg4[%c8, %c0_57], %169 {strides = array<i32>} : memref<16x32xf32, #tpu.memory_space<vmem>>, vector<8x32xf32>,
    return
  }
}

</mosaic_0001>

<bundles_post_ra>
// kernel: tpu_custom_call.1
= control target key start
LH: loop header
LB: loop body
LE: loop exit
PB: predicated region body
PF: predicated region fallthrough
CT: control target
= control target key end

     0   :  { %9 = vsyncpa [#allocation3], 0  ;;  %s2720_s0 = inlined_call_operand.hbm [shape: f32[16,32], index: 0, kind: input, shape index: {}]   ;;  %s2721_s1 = inlined_call_operand.hbm [shape: f32[32,96], index: 1, kind: input, shape index: {}]   ;;  %s2722_s2 = inlined_call_operand.hbm [shape: f32[32,32], index: 2, kind: input, shape index: {}]   ;;  %s2723_s3 = inlined_call_operand.vmem [shape: f32[1,32], index: 3, kind: input, shape index: {}]   ;;  %s2724_s4 = inlined_call_operand.hbm [shape: f32[16,32], index: 4, kind: output, shape index: {}]  }
   0x1   :  { %10 = vsyncpa [#allocation6], 0 }
   0x2   :  { %11 = vsyncpa [#allocation4], 0  ;;  %s2452_s15 = smov [#allocation5]   ;;  %s2453_s17 = smov [#allocation2]  }
   0x3   :  { %s29_s16 = sshll.u32 %s2452_s15, 4  ;;  %s17_s18 = sshll.u32 %s2453_s17, 4  ;;  %s30_s16 = int_to_ptr.vmem [resolvable:$true] %s29_s16  ;;  %s18_s18 = int_to_ptr.vmem [resolvable:$true] %s17_s18 }
   0x4   :  { %s2374_s19 = scalar_lea.vmem %s30_s16, 512  ;;  %p2379_p1 = scmp.lt.s32.totalorder %s30_s16, %s30_s16 }
   0x5   :  { %p2375_p0 = scmp.ne.s32.totalorder %s30_s16, %s2374_s19  ;;  %p2380_p2 = scmp.lt.s32.totalorder %s2374_s19, %s2374_s19 }
   0x7   :  { %p2381_p3 = por %p2380_p2, %p2379_p1 }
   0x9   :  { %p2382_p4 = pnand %p2381_p3, %p2375_p0 }
   0xb   :  { %2385 = shalt.err (!%p2382_p4)
}
   0xc   :  { %s2454_s20 = smov 128   ;;  %s2455_s21 = smov 8  }
   0xd   :  { %35 = dma.hbm_to_vmem [thread:$0]  %s2721_s1, 512, %s30_s16, [#allocation6], %s2454_s20, %s2454_s20, %s2455_s21  }
   0xe   :  { %s2394_s24 = scalar_lea.vmem %s18_s18, 256  ;;  %p2399_p6 = scmp.lt.s32.totalorder %s18_s18, %s18_s18 }
   0xf   :  { %p2395_p5 = scmp.ne.s32.totalorder %s18_s18, %s2394_s24  ;;  %p2400_p7 = scmp.lt.s32.totalorder %s2394_s24, %s2394_s24 }
  0x11   :  { %p2401_p8 = por %p2400_p7, %p2399_p6 }
  0x13   :  { %p2402_p9 = pnand %p2401_p8, %p2395_p5 }
  0x15   :  { %2405 = shalt.err (!%p2402_p9)
}
  0x16   :  { %23 = dma.hbm_to_vmem [thread:$0]  %s2720_s0, 256, %s18_s18, [#allocation3], %s2454_s20, %s2454_s20, %s2455_s21  }
  0x17   :  { %s2456_s27 = smov [#allocation7]  }
  0x18   :  { %s41_s28 = sshll.u32 %s2456_s27, 4  ;;  %s42_s28 = int_to_ptr.vmem [resolvable:$true] %s41_s28 }
  0x19   :  { %s2414_s29 = scalar_lea.vmem %s42_s28, 512  ;;  %p2419_p11 = scmp.lt.s32.totalorder %s42_s28, %s42_s28 }
  0x1a   :  { %p2415_p10 = scmp.ne.s32.totalorder %s42_s28, %s2414_s29  ;;  %p2420_p12 = scmp.lt.s32.totalorder %s2414_s29, %s2414_s29 }
  0x1c   :  { %p2421_p13 = por %p2420_p12, %p2419_p11 }
  0x1e   :  { %p2422_p0 = pnand %p2421_p13, %p2415_p10 }
  0x20   :  { %2425 = shalt.err (!%p2422_p0)
}
  0x21   :  { %47 = dma.hbm_to_vmem [thread:$0]  %s2722_s2, 512, %s42_s28, [#allocation6], %s2454_s20, %s2454_s20, %s2455_s21  }
  0x22   :  { %2446 = dma.done.wait [#allocation3], 256  }
  0x23   :  { %2447 = vsyncadd [#allocation3], 4294967040 }
  0x24   :  { %2448 = dma.done.wait [#allocation6], 1024  }
  0x25   :  { %2449 = vsyncadd [#allocation6], 4294966272  ;;  %vm70_vm0 = vcmask 261120   ;;  %v64_v0 = vld [vmem:[#allocation5 + $0x18] sm:$0xff]  ;;  %v63_v1 = vld [vmem:[#allocation5 + $0x10] sm:$0xff]  ;;  %v2457_v6 = vmov 0.0  }
  0x26   :  { %2184 = vmatprep.subr.mxu0 %v64_v0  ;;  %v59_v2 = vld [vmem:[#allocation2] sm:$0xff]  ;;  %v62_v3 = vld [vmem:[#allocation5 + $0x8] sm:$0xff]  ;;  %v61_v4 = vld [vmem:[#allocation5] sm:$0xff]  ;;  %2195 = vmatprep.subr.mxu1 %v2457_v6  ;;  %vm2458_vm1 = vmmov 0   ;;  %s2459_s0 = smov 120   ;;  %s2460_s2 = smov 96  }
  0x27   :  { %2185 = vmatpush3.msra.mxu0 %v64_v0  ;;  %2192 = vmatprep.mubr.msk.f32.mxu0 %vm70_vm0, %v59_v2  ;;  %v60_v5 = vld [vmem:[#allocation2 + $0x8] sm:$0xff]  ;;  %s2461_s5 = smov 88   ;;  %vm155_vm2 = vcmask 64512   ;;  %s2462_s6 = smov 56   ;;  %v2563_v38 = vld [vmem:[#allocation7] sm:$0xff]  ;;  %v2566_v39 = vld [vmem:[#allocation7 + $0x8] sm:$0xff] }
  0x28   :  { %2186 = vmatprep.subr.mxu0 %v63_v1  ;;  %2197 = vmatprep.mubr.msk.f32.mxu1 %vm2458_vm1, %v2457_v6  ;;  %s2463_s7 = smov 64   ;;  %s2464_s8 = smov 80   ;;  %v2603_v2 = vld [vmem:[#allocation7 + $0x10] sm:$0xff] }
  0x29   :  { %2187 = vmatpush3.msra.mxu0 %v63_v1  ;;  %s2465_s9 = smov 112   ;;  %s2466_s10 = smov 72  }
  0x2a   :  { %2188 = vmatprep.subr.mxu0 %v62_v3  ;;  %s2467_s11 = smov 104   ;;  %s2468_s12 = smov 48  }
  0x2b   :  { %2189 = vmatpush3.msra.mxu0 %v62_v3  ;;  %s2469_s13 = smov 40  }
  0x2c   :  { %2190 = vmatprep.subr.mxu0 %v61_v4 }
  0x2d   :  { %2191 = vmatpush3.msra.mxu0 %v61_v4 }
  0x2e   :  { %2193 = vmatmul.mubr.msk.f32.vlgmr.msra.gmra.mxu0 %vm70_vm0, %v60_v5  ;;  %2205 = vmatprep.subr.mxu0 %v2457_v6 }
  0x2f   :  { %2207 = vmatprep.mubr.msk.f32.mxu0 %vm2458_vm1, %v2457_v6 }
  0xee   :  { %v2522_v7 = vpop.f32.mrf.mxu0 }
  0xf0   :  { %v2524_v8 = vpop.f32.mrf.mxu0 }
  0xf1   :  { %318 = vrot.lane.b32.xlu1 %v2524_v8, %s2459_s0  ;;  %153 = vrot.lane.b32.xlu0 %v2524_v8, %s2460_s2 }
  0xf5   :  { %320 = vrot.lane.b32.xlu0 %v2524_v8, %s2461_s5 }
 0x163   :  { %v154_v9 = vpop.permute.xlu0 %153  ;;  %v319_v11 = vpop.permute.xlu1 %318 }
 0x164   :  { %2196 = vmatpush3.xpose.msk.msra.mxu1 %vm155_vm2, %v154_v9 }
 0x165   :  { %2200 = vmatprep.subr.mxu1 %v2457_v6 }
 0x167   :  { %2198 = vmatmul.mubr.msk.f32.vlgmr.msra.gmra.mxu1 %vm155_vm2, %v2524_v8  ;;  %v321_v10 = vpop.permute.xlu0 %320 }
 0x168   :  { %2206 = vmatpush3.xpose.msk.msra.mxu0 %vm155_vm2, %v321_v10  ;;  %2202 = vmatprep.mubr.msk.f32.mxu1 %vm2458_vm1, %v2457_v6 }
 0x169   :  { %2215 = vmatprep.subr.mxu0 %v2457_v6 }
 0x16b   :  { %2208 = vmatmul.mubr.msk.f32.vlgmr.msra.gmra.mxu0 %vm155_vm2, %v319_v11 }
 0x16c   :  { %2217 = vmatprep.mubr.msk.f32.mxu0 %vm2458_vm1, %v2457_v6  ;;  %2216 = vmatpush3.msra.mxu0 %v2566_v39 }
 0x16d   :  { %2225 = vmatprep.subr.mxu0 %v2457_v6 }
 0x227   :  { %v226_v12 = vpop.f32.mrf.mxu1 }
 0x228   :  { %v230_v13 = vmul.f32 0.35355338, %v226_v12 }
 0x229   :  { %v2199_v14 = vpop.f32.mrf.mxu1 }
 0x22a   :  { %v231_v15 = vsel %vm155_vm2, %v230_v13, -inf }
 0x22b   :  { %232 = vmax.xlane.f32.xlu1 %v231_v15  ;;  %v392_v16 = vpop.f32.mrf.mxu0 }
 0x22c   :  { %v396_v17 = vmul.f32 0.35355338, %v392_v16 }
 0x22d   :  { %v2209_v18 = vpop.f32.mrf.mxu0 }
 0x22e   :  { %v397_v19 = vsel %vm155_vm2, %v396_v17, -inf }
 0x22f   :  { %398 = vmax.xlane.f32.xlu0 %v397_v19 }
 0x2b4   :  { %v233_v20 = vpop.xlane.xlu1 %232 }
 0x2b5   :  { %v234_v21 = vsub.f32 %v230_v13, %v233_v20 }
 0x2b7   :  { %v235_v22 = vmul.f32 1.442695, %v234_v21 }
 0x2b8   :  { %v399_v23 = vpop.xlane.xlu0 %398 }
 0x2b9   :  { %2334 = vpow2.f32 %v235_v22  ;;  %v400_v24 = vsub.f32 %v396_v17, %v399_v23 }
 0x2bb   :  { %v401_v25 = vmul.f32 1.442695, %v400_v24 }
 0x2bd   :  { %2336 = vpow2.f32 %v401_v25 }
 0x2c6   :  { %v2335_v26 = vpop.eup %2334 }
 0x2c7   :  { %v237_v27 = vsel %vm155_vm2, %v2335_v26, 0.0 }
 0x2c8   :  { %238 = vadd.xlane.f32.xlu0 %v237_v27 }
 0x2ca   :  { %v2337_v28 = vpop.eup %2336 }
 0x2cb   :  { %v403_v29 = vsel %vm155_vm2, %v2337_v28, 0.0 }
 0x2cc   :  { %404 = vadd.xlane.f32.xlu1 %v403_v29 }
 0x2dd   :  { %408 = vrot.lane.b32.xlu1 %v2524_v8, %s2462_s6 }
 0x2de   :  { %242 = vrot.lane.b32.xlu0 %v2524_v8, %s2463_s7 }
 0x2e1   :  { %632 = vrot.lane.b32.xlu1 %v2524_v8, %s2464_s8 }
 0x2e2   :  { %630 = vrot.lane.b32.xlu0 %v2524_v8, %s2465_s9 }
 0x351   :  { %v239_v30 = vpop.xlane.xlu0 %238 }
 0x352   :  { %2338 = vrcp.f32 %v239_v30 }
 0x355   :  { %v405_v31 = vpop.xlane.xlu1 %404  ;;  %v243_v32 = vpop.permute.xlu0 %242 }
 0x356   :  { %2340 = vrcp.f32 %v405_v31  ;;  %2201 = vmatpush3.msra.mxu1 %v243_v32 }
 0x357   :  { %2210 = vmatprep.subr.mxu1 %v2457_v6 }
 0x359   :  { %v409_v35 = vpop.permute.xlu1 %408  ;;  %v631_v45 = vpop.permute.xlu0 %630 }
 0x35d   :  { %v633_v43 = vpop.permute.xlu1 %632 }
 0x35f   :  { %v2339_v33 = vpop.eup %2338 }
 0x360   :  { %v241_v34 = vmul.f32 %v2339_v33, %v2335_v26  ;;  %v2636_v26 = vld [vmem:[#allocation7 + $0x18] sm:$0xff] }
 0x362   :  { %2203 = vmatmul.mubr.msk.f32.vlgmr.msra.gmra.mxu1 %vm155_vm2, %v241_v34 }
 0x363   :  { %v2341_v36 = vpop.eup %2340  ;;  %2211 = vmatpush3.msra.mxu1 %v409_v35  ;;  %2212 = vmatprep.mubr.msk.f32.mxu1 %vm2458_vm1, %v2457_v6 }
 0x364   :  { %v407_v37 = vmul.f32 %v2341_v36, %v2337_v28  ;;  %2220 = vmatprep.subr.mxu1 %v2457_v6 }
 0x366   :  { %2213 = vmatmul.mubr.msk.f32.vlgmr.msra.gmra.mxu1 %vm155_vm2, %v407_v37 }
 0x367   :  { %2222 = vmatprep.mubr.msk.f32.mxu1 %vm2458_vm1, %v2457_v6  ;;  %2221 = vmatpush3.msra.mxu1 %v2563_v38 }
 0x368   :  { %2230 = vmatprep.subr.mxu1 %v2457_v6 }
 0x422   :  { %v314_v40 = vpop.f32.mrf.mxu1 }
 0x423   :  { %2223 = vmatmul.mubr.msk.f32.vlgmr.msra.gmra.mxu1 %vm155_vm2, %v314_v40 }
 0x424   :  { %v2204_v41 = vpop.f32.mrf.mxu1  ;;  %2232 = vmatprep.mubr.msk.f32.mxu1 %vm2458_vm1, %v2457_v6 }
 0x426   :  { %v480_v42 = vpop.f32.mrf.mxu1 }
 0x427   :  { %2218 = vmatmul.mubr.msk.f32.vlgmr.msra.gmra.mxu0 %vm155_vm2, %v480_v42 }
 0x428   :  { %2226 = vmatpush3.xpose.msk.msra.mxu0 %vm155_vm2, %v633_v43  ;;  %v2214_v44 = vpop.f32.mrf.mxu1  ;;  %2227 = vmatprep.mubr.msk.f32.mxu0 %vm2458_vm1, %v2457_v6 }
 0x429   :  { %2235 = vmatprep.subr.mxu0 %v2457_v6 }
 0x42b   :  { %2228 = vmatmul.mubr.msk.f32.vlgmr.msra.gmra.mxu0 %vm155_vm2, %v631_v45 }
 0x42c   :  { %2237 = vmatprep.mubr.msk.f32.mxu0 %vm2458_vm1, %v2457_v6  ;;  %2236 = vmatpush3.msra.mxu0 %v2603_v2 }
 0x42d   :  { %2245 = vmatprep.subr.mxu0 %v2457_v6 }
 0x4e3   :  { %v626_v46 = vpop.f32.mrf.mxu1 }
 0x4e5   :  { %v2224_v47 = vpop.f32.mrf.mxu1 }
 0x4e7   :  { %v553_v48 = vpop.f32.mrf.mxu0 }
 0x4e8   :  { %v2582_v49 = vadd.f32 %v626_v46, %v553_v48 }
 0x4e9   :  { %v2219_v50 = vpop.f32.mrf.mxu0 }
 0x4eb   :  { %v704_v51 = vpop.f32.mrf.mxu0 }
 0x4ec   :  { %v708_v52 = vmul.f32 0.35355338, %v704_v51 }
 0x4ed   :  { %v2229_v53 = vpop.f32.mrf.mxu0 }
 0x4ee   :  { %v709_v54 = vsel %vm155_vm2, %v708_v52, -inf }
 0x4ef   :  { %710 = vmax.xlane.f32.xlu1 %v709_v54 }
 0x500   :  { %872 = vrot.lane.b32.xlu1 %v2524_v8, %s2466_s10 }
 0x504   :  { %870 = vrot.lane.b32.xlu1 %v2524_v8, %s2467_s11 }
 0x508   :  { %1119 = vrot.lane.b32.xlu1 %v2522_v7, %s2460_s2 }
 0x578   :  { %v711_v55 = vpop.xlane.xlu1 %710 }
 0x579   :  { %v712_v56 = vsub.f32 %v708_v52, %v711_v55 }
 0x57b   :  { %v713_v57 = vmul.f32 1.442695, %v712_v56 }
 0x57c   :  { %v873_v63 = vpop.permute.xlu1 %872 }
 0x57d   :  { %2342 = vpow2.f32 %v713_v57 }
 0x580   :  { %v871_v1 = vpop.permute.xlu1 %870 }
 0x584   :  { %v1120_v20 = vpop.permute.xlu1 %1119 }
 0x58a   :  { %v2343_v58 = vpop.eup %2342 }
 0x58b   :  { %v715_v59 = vsel %vm155_vm2, %v2343_v58, 0.0 }
 0x58c   :  { %716 = vadd.xlane.f32.xlu0 %v715_v59 }
 0x5a2   :  { %720 = vrot.lane.b32.xlu0 %v2524_v8, %s2468_s12 }
 0x615   :  { %v717_v60 = vpop.xlane.xlu0 %716 }
 0x616   :  { %2344 = vrcp.f32 %v717_v60 }
 0x619   :  { %v721_v61 = vpop.permute.xlu0 %720 }
 0x61a   :  { %2231 = vmatpush3.msra.mxu1 %v721_v61 }
 0x61b   :  { %2240 = vmatprep.subr.mxu1 %v2457_v6 }
 0x623   :  { %v2345_v62 = vpop.eup %2344 }
 0x624   :  { %v719_v0 = vmul.f32 %v2345_v62, %v2343_v58 }
 0x626   :  { %2233 = vmatmul.mubr.msk.f32.vlgmr.msra.gmra.mxu1 %vm155_vm2, %v719_v0 }
 0x627   :  { %2241 = vmatpush3.xpose.msk.msra.mxu1 %vm155_vm2, %v873_v63  ;;  %2242 = vmatprep.mubr.msk.f32.mxu1 %vm2458_vm1, %v2457_v6 }
 0x628   :  { %2250 = vmatprep.subr.mxu1 %v2457_v6 }
 0x62a   :  { %2243 = vmatmul.mubr.msk.f32.vlgmr.msra.gmra.mxu1 %vm155_vm2, %v871_v1 }
 0x62b   :  { %2252 = vmatprep.mubr.msk.f32.mxu1 %vm2458_vm1, %v2457_v6  ;;  %2251 = vmatpush3.msra.mxu1 %v2636_v26 }
 0x62c   :  { %2260 = vmatprep.subr.mxu1 %v2457_v6 }
 0x6e6   :  { %v792_v3 = vpop.f32.mrf.mxu1 }
 0x6e7   :  { %2238 = vmatmul.mubr.msk.f32.vlgmr.msra.gmra.mxu0 %vm155_vm2, %v792_v3 }
 0x6e8   :  { %v2234_v4 = vpop.f32.mrf.mxu1  ;;  %2247 = vmatprep.mubr.msk.f32.mxu0 %vm2458_vm1, %v2457_v6 }
 0x6ea   :  { %v944_v5 = vpop.f32.mrf.mxu1 }
 0x6eb   :  { %v948_v9 = vmul.f32 0.35355338, %v944_v5 }
 0x6ec   :  { %v2244_v10 = vpop.f32.mrf.mxu1 }
 0x6ed   :  { %v949_v11 = vsel %vm155_vm2, %v948_v9, -inf }
 0x6ee   :  { %950 = vmax.xlane.f32.xlu0 %v949_v11 }
 0x704   :  { %960 = vrot.lane.b32.xlu0 %v2524_v8, %s2469_s13 }
 0x708   :  { %1285 = vrot.lane.b32.xlu0 %v2522_v7, %s2461_s5 }
 0x777   :  { %v951_v12 = vpop.xlane.xlu0 %950 }
 0x778   :  { %v952_v13 = vsub.f32 %v948_v9, %v951_v12 }
 0x77a   :  { %v953_v14 = vmul.f32 1.442695, %v952_v13 }
 0x77b   :  { %v961_v15 = vpop.permute.xlu0 %960 }
 0x77c   :  { %2346 = vpow2.f32 %v953_v14  ;;  %2246 = vmatpush3.msra.mxu0 %v961_v15 }
 0x77d   :  { %2255 = vmatprep.subr.mxu0 %v2457_v6 }
 0x77f   :  { %v1286_v24 = vpop.permute.xlu0 %1285 }
 0x789   :  { %v2347_v16 = vpop.eup %2346 }
 0x78a   :  { %v955_v17 = vsel %vm155_vm2, %v2347_v16, 0.0 }
 0x78b   :  { %956 = vadd.xlane.f32.xlu1 %v955_v17 }
 0x79c   :  { %1283 = vrot.lane.b32.xlu1 %v2522_v7, %s2459_s0 }
 0x7a7   :  { %v865_v18 = vpop.f32.mrf.mxu0 }
 0x7a8   :  { %v869_v8 = vadd.f32 %v865_v18, %v2582_v49  ;;  %v2659_v49 = vld [vmem:[%s2723_s3] ss:$0 sm:$0xff]  ;;  %s2470_s3 = smov [#allocation8]  }
 0x7a9   :  { %v2239_v19 = vpop.f32.mrf.mxu0  ;;  %s2082_s16 = sshll.u32 %s2470_s3, 4  ;;  %s2083_s16 = int_to_ptr.vmem [resolvable:$true] %s2082_s16 }
 0x7aa   :  { %s2426_s17 = scalar_lea.vmem %s2083_s16, 256  ;;  %p2431_p2 = scmp.lt.s32.totalorder %s2083_s16, %s2083_s16 }
 0x7ab   :  { %p2427_p1 = scmp.ne.s32.totalorder %s2083_s16, %s2426_s17  ;;  %p2432_p3 = scmp.lt.s32.totalorder %s2426_s17, %s2426_s17 }
 0x7ad   :  { %p2433_p4 = por %p2432_p3, %p2431_p2 }
 0x7af   :  { %p2434_p5 = pnand %p2433_p4, %p2427_p1 }
 0x814   :  { %v957_v21 = vpop.xlane.xlu1 %956 }
 0x815   :  { %2348 = vrcp.f32 %v957_v21 }
 0x818   :  { %v1284_v25 = vpop.permute.xlu1 %1283 }
 0x822   :  { %v2349_v22 = vpop.eup %2348 }
 0x823   :  { %v959_v23 = vmul.f32 %v2349_v22, %v2347_v16 }
 0x825   :  { %2248 = vmatmul.mubr.msk.f32.vlgmr.msra.gmra.mxu0 %vm155_vm2, %v959_v23 }
 0x826   :  { %2256 = vmatpush3.xpose.msk.msra.mxu0 %vm155_vm2, %v1120_v20  ;;  %2257 = vmatprep.mubr.msk.f32.mxu0 %vm2458_vm1, %v2457_v6 }
 0x827   :  { %2265 = vmatprep.subr.mxu0 %v2457_v6 }
 0x829   :  { %2258 = vmatmul.mubr.msk.f32.vlgmr.msra.gmra.mxu0 %vm155_vm2, %v2522_v7 }
 0x82a   :  { %2266 = vmatpush3.xpose.msk.msra.mxu0 %vm155_vm2, %v1286_v24  ;;  %2267 = vmatprep.mubr.msk.f32.mxu0 %vm2458_vm1, %v2457_v6 }
 0x82b   :  { %2275 = vmatprep.subr.mxu0 %v2457_v6 }
 0x82d   :  { %2268 = vmatmul.mubr.msk.f32.vlgmr.msra.gmra.mxu0 %vm155_vm2, %v1284_v25 }
 0x82e   :  { %2276 = vmatpush3.msra.mxu0 %v2566_v39  ;;  %2277 = vmatprep.mubr.msk.f32.mxu0 %vm2458_vm1, %v2457_v6 }
 0x82f   :  { %2285 = vmatprep.subr.mxu0 %v2457_v6 }
 0x8e5   :  { %v1032_v27 = vpop.f32.mrf.mxu0 }
 0x8e6   :  { %2253 = vmatmul.mubr.msk.f32.vlgmr.msra.gmra.mxu1 %vm155_vm2, %v1032_v27 }
 0x8e7   :  { %v2249_v28 = vpop.f32.mrf.mxu0  ;;  %2262 = vmatprep.mubr.msk.f32.mxu1 %vm2458_vm1, %v2457_v6 }
 0x8e9   :  { %v1191_v29 = vpop.f32.mrf.mxu0 }
 0x8ea   :  { %v1195_v30 = vmul.f32 0.35355338, %v1191_v29 }
 0x8eb   :  { %v2259_v31 = vpop.f32.mrf.mxu0 }
 0x8ec   :  { %v1196_v32 = vsel %vm155_vm2, %v1195_v30, -inf }
 0x8ed   :  { %1197 = vmax.xlane.f32.xlu0 %v1196_v32  ;;  %v1357_v33 = vpop.f32.mrf.mxu0 }
 0x8ee   :  { %v1361_v34 = vmul.f32 0.35355338, %v1357_v33 }
 0x8ef   :  { %v2269_v35 = vpop.f32.mrf.mxu0 }
 0x8f0   :  { %v1362_v36 = vsel %vm155_vm2, %v1361_v34, -inf }
 0x8f1   :  { %1363 = vmax.xlane.f32.xlu1 %v1362_v36 }
 0x902   :  { %1207 = vrot.lane.b32.xlu1 %v2522_v7, %s2463_s7 }
 0x906   :  { %1597 = vrot.lane.b32.xlu1 %v2522_v7, %s2464_s8 }
 0x90a   :  { %1595 = vrot.lane.b32.xlu1 %v2522_v7, %s2465_s9 }
 0x976   :  { %v1198_v37 = vpop.xlane.xlu0 %1197 }
 0x977   :  { %v1199_v39 = vsub.f32 %v1195_v30, %v1198_v37 }
 0x979   :  { %v1200_v40 = vmul.f32 1.442695, %v1199_v39 }
 0x97a   :  { %v1364_v41 = vpop.xlane.xlu1 %1363 }
 0x97b   :  { %2350 = vpow2.f32 %v1200_v40  ;;  %v1365_v42 = vsub.f32 %v1361_v34, %v1364_v41 }
 0x97d   :  { %v1366_v43 = vmul.f32 1.442695, %v1365_v42 }
 0x97e   :  { %v1208_v44 = vpop.permute.xlu1 %1207 }
 0x97f   :  { %2352 = vpow2.f32 %v1366_v43  ;;  %2261 = vmatpush3.msra.mxu1 %v1208_v44 }
 0x980   :  { %2270 = vmatprep.subr.mxu1 %v2457_v6 }
 0x982   :  { %v1598_v62 = vpop.permute.xlu1 %1597 }
 0x988   :  { %v2351_v45 = vpop.eup %2350 }
 0x989   :  { %v1202_v46 = vsel %vm155_vm2, %v2351_v45, 0.0 }
 0x98a   :  { %1203 = vadd.xlane.f32.xlu0 %v1202_v46 }
 0x98c   :  { %v2353_v47 = vpop.eup %2352 }
 0x98d   :  { %v1368_v48 = vsel %vm155_vm2, %v2353_v47, 0.0 }
 0x98e   :  { %1369 = vadd.xlane.f32.xlu0 %v1368_v48 }
 0x9a4   :  { %1373 = vrot.lane.b32.xlu0 %v2522_v7, %s2462_s6 }
 0x9a6   :  { %v1105_v50 = vpop.f32.mrf.mxu1 }
 0x9a7   :  { %v1109_v51 = vadd.f32 %v1105_v50, %v869_v8 }
 0x9a8   :  { %v2254_v52 = vpop.f32.mrf.mxu1 }
 0x9a9   :  { %v1116_v53 = vadd.f32 %v2659_v49, %v1109_v51 }
 0x9ab   :  { %1117 = vst.msk [vmem:[#allocation8] sm:$0xff] %vm70_vm0, %v1116_v53 }
 0xa13   :  { %v1204_v54 = vpop.xlane.xlu0 %1203 }
 0xa14   :  { %2354 = vrcp.f32 %v1204_v54 }
 0xa17   :  { %v1370_v55 = vpop.xlane.xlu0 %1369 }
 0xa18   :  { %2356 = vrcp.f32 %v1370_v55 }
 0xa1b   :  { %v1374_v58 = vpop.permute.xlu0 %1373 }
 0xa21   :  { %v2355_v56 = vpop.eup %2354 }
 0xa22   :  { %v1206_v57 = vmul.f32 %v2355_v56, %v2351_v45 }
 0xa24   :  { %2263 = vmatmul.mubr.msk.f32.vlgmr.msra.gmra.mxu1 %vm155_vm2, %v1206_v57 }
 0xa25   :  { %v2357_v59 = vpop.eup %2356  ;;  %2271 = vmatpush3.msra.mxu1 %v1374_v58  ;;  %2272 = vmatprep.mubr.msk.f32.mxu1 %vm2458_vm1, %v2457_v6 }
 0xa26   :  { %v1372_v60 = vmul.f32 %v2357_v59, %v2353_v47  ;;  %2280 = vmatprep.subr.mxu1 %v2457_v6 }
 0xa28   :  { %2273 = vmatmul.mubr.msk.f32.vlgmr.msra.gmra.mxu1 %vm155_vm2, %v1372_v60 }
 0xa29   :  { %2281 = vmatpush3.msra.mxu1 %v2563_v38  ;;  %2282 = vmatprep.mubr.msk.f32.mxu1 %vm2458_vm1, %v2457_v6  ;;  %v1596_v38 = vpop.permute.xlu1 %1595 }
 0xa2a   :  { %2290 = vmatprep.subr.mxu1 %v2457_v6 }
 0xae4   :  { %v1279_v61 = vpop.f32.mrf.mxu1 }
 0xae5   :  { %2283 = vmatmul.mubr.msk.f32.vlgmr.msra.gmra.mxu1 %vm155_vm2, %v1279_v61 }
 0xae6   :  { %v2264_v63 = vpop.f32.mrf.mxu1  ;;  %2292 = vmatprep.mubr.msk.f32.mxu1 %vm2458_vm1, %v2457_v6 }
 0xae8   :  { %v1445_v0 = vpop.f32.mrf.mxu1 }
 0xae9   :  { %2278 = vmatmul.mubr.msk.f32.vlgmr.msra.gmra.mxu0 %vm155_vm2, %v1445_v0 }
 0xaea   :  { %2286 = vmatpush3.xpose.msk.msra.mxu0 %vm155_vm2, %v1598_v62  ;;  %v2274_v1 = vpop.f32.mrf.mxu1  ;;  %2287 = vmatprep.mubr.msk.f32.mxu0 %vm2458_vm1, %v2457_v6 }
 0xaeb   :  { %2295 = vmatprep.subr.mxu0 %v2457_v6 }
 0xaed   :  { %2288 = vmatmul.mubr.msk.f32.vlgmr.msra.gmra.mxu0 %vm155_vm2, %v1596_v38 }
 0xaee   :  { %2296 = vmatpush3.msra.mxu0 %v2603_v2  ;;  %2297 = vmatprep.mubr.msk.f32.mxu0 %vm2458_vm1, %v2457_v6 }
 0xaef   :  { %2305 = vmatprep.subr.mxu0 %v2457_v6 }
 0xba5   :  { %v1591_v3 = vpop.f32.mrf.mxu1 }
 0xba7   :  { %v2284_v4 = vpop.f32.mrf.mxu1 }
 0xba9   :  { %v1518_v5 = vpop.f32.mrf.mxu0 }
 0xbaa   :  { %v1592_v9 = vadd.f32 %v1591_v3, %v1518_v5 }
 0xbab   :  { %v2279_v10 = vpop.f32.mrf.mxu0 }
 0xbad   :  { %v1669_v11 = vpop.f32.mrf.mxu0 }
 0xbae   :  { %v1673_v12 = vmul.f32 0.35355338, %v1669_v11 }
 0xbaf   :  { %v2289_v13 = vpop.f32.mrf.mxu0 }
 0xbb0   :  { %v1674_v14 = vsel %vm155_vm2, %v1673_v12, -inf }
 0xbb1   :  { %1675 = vmax.xlane.f32.xlu0 %v1674_v14 }
 0xbc7   :  { %1685 = vrot.lane.b32.xlu0 %v2522_v7, %s2468_s12 }
 0xbcb   :  { %1835 = vrot.lane.b32.xlu0 %v2522_v7, %s2467_s11 }
 0xc3a   :  { %v1676_v2 = vpop.xlane.xlu0 %1675 }
 0xc3b   :  { %v1677_v15 = vsub.f32 %v1673_v12, %v1676_v2 }
 0xc3d   :  { %v1678_v16 = vmul.f32 1.442695, %v1677_v15 }
 0xc3e   :  { %v1686_v17 = vpop.permute.xlu0 %1685 }
 0xc3f   :  { %2358 = vpow2.f32 %v1678_v16  ;;  %2291 = vmatpush3.msra.mxu1 %v1686_v17 }
 0xc40   :  { %2300 = vmatprep.subr.mxu1 %v2457_v6 }
 0xc42   :  { %v1836_v23 = vpop.permute.xlu0 %1835 }
 0xc4c   :  { %v2359_v18 = vpop.eup %2358 }
 0xc4d   :  { %v1680_v8 = vsel %vm155_vm2, %v2359_v18, 0.0 }
 0xc4e   :  { %1681 = vadd.xlane.f32.xlu1 %v1680_v8 }
 0xc5f   :  { %1837 = vrot.lane.b32.xlu1 %v2522_v7, %s2466_s10 }
 0xcd7   :  { %v1682_v19 = vpop.xlane.xlu1 %1681 }
 0xcd8   :  { %2360 = vrcp.f32 %v1682_v19 }
 0xcdb   :  { %v1838_v22 = vpop.permute.xlu1 %1837 }
 0xce5   :  { %v2361_v20 = vpop.eup %2360 }
 0xce6   :  { %v1684_v21 = vmul.f32 %v2361_v20, %v2359_v18 }
 0xce8   :  { %2293 = vmatmul.mubr.msk.f32.vlgmr.msra.gmra.mxu1 %vm155_vm2, %v1684_v21 }
 0xce9   :  { %2301 = vmatpush3.xpose.msk.msra.mxu1 %vm155_vm2, %v1838_v22  ;;  %2302 = vmatprep.mubr.msk.f32.mxu1 %vm2458_vm1, %v2457_v6 }
 0xcea   :  { %2310 = vmatprep.subr.mxu1 %v2457_v6 }
 0xcec   :  { %2303 = vmatmul.mubr.msk.f32.vlgmr.msra.gmra.mxu1 %vm155_vm2, %v1836_v23 }
 0xced   :  { %2311 = vmatpush3.msra.mxu1 %v2636_v26  ;;  %2312 = vmatprep.mubr.msk.f32.mxu1 %vm2458_vm1, %v2457_v6 }
 0xda8   :  { %v1757_v24 = vpop.f32.mrf.mxu1 }
 0xda9   :  { %2298 = vmatmul.mubr.msk.f32.vlgmr.msra.gmra.mxu0 %vm155_vm2, %v1757_v24 }
 0xdaa   :  { %v2294_v25 = vpop.f32.mrf.mxu1  ;;  %2307 = vmatprep.mubr.msk.f32.mxu0 %vm2458_vm1, %v2457_v6 }
 0xdac   :  { %v1909_v27 = vpop.f32.mrf.mxu1 }
 0xdad   :  { %v1913_v28 = vmul.f32 0.35355338, %v1909_v27 }
 0xdae   :  { %v2304_v29 = vpop.f32.mrf.mxu1 }
 0xdaf   :  { %v1914_v30 = vsel %vm155_vm2, %v1913_v28, -inf }
 0xdb0   :  { %1915 = vmax.xlane.f32.xlu1 %v1914_v30 }
 0xe39   :  { %v1916_v31 = vpop.xlane.xlu1 %1915 }
 0xe3a   :  { %v1917_v32 = vsub.f32 %v1913_v28, %v1916_v31 }
 0xe3c   :  { %v1918_v33 = vmul.f32 1.442695, %v1917_v32 }
 0xe3e   :  { %2362 = vpow2.f32 %v1918_v33 }
 0xe4b   :  { %v2363_v26 = vpop.eup %2362 }
 0xe4c   :  { %v1920_v34 = vsel %vm155_vm2, %v2363_v26, 0.0 }
 0xe4d   :  { %1921 = vadd.xlane.f32.xlu0 %v1920_v34 }
 0xe63   :  { %1925 = vrot.lane.b32.xlu0 %v2522_v7, %s2469_s13 }
 0xe69   :  { %v1830_v35 = vpop.f32.mrf.mxu0 }
 0xe6a   :  { %v1834_v36 = vadd.f32 %v1830_v35, %v1592_v9 }
 0xe6b   :  { %v2299_v6 = vpop.f32.mrf.mxu0 }
 0xed6   :  { %v1922_v37 = vpop.xlane.xlu0 %1921 }
 0xed7   :  { %2364 = vrcp.f32 %v1922_v37 }
 0xeda   :  { %v1926_v39 = vpop.permute.xlu0 %1925 }
 0xedb   :  { %2306 = vmatpush3.msra.mxu0 %v1926_v39 }
 0xee4   :  { %v2365_v40 = vpop.eup %2364 }
 0xee5   :  { %v1924_v41 = vmul.f32 %v2365_v40, %v2363_v26 }
 0xee7   :  { %2308 = vmatmul.mubr.msk.f32.vlgmr.msra.gmra.mxu0 %vm155_vm2, %v1924_v41 }
 0xfa7   :  { %v1997_v42 = vpop.f32.mrf.mxu0 }
 0xfa8   :  { %2313 = vmatmul.mubr.msk.f32.vlgmr.msra.gmra.mxu1 %vm155_vm2, %v1997_v42 }
 0xfa9   :  { %v2309_v43 = vpop.f32.mrf.mxu0 }
0x1068   :  { %v2070_v44 = vpop.f32.mrf.mxu1 }
0x1069   :  { %v2074_v45 = vadd.f32 %v2070_v44, %v1834_v36 }
0x106a   :  { %v2314_v7 = vpop.f32.mrf.mxu1 }
0x106b   :  { %v2075_v46 = vadd.f32 %v2659_v49, %v2074_v45 }
0x106d   :  { %2076 = vst.msk [vmem:[#allocation8 + $0x8] sm:$0xff] %vm70_vm0, %v2075_v46 }
0x106e   :  { %2437 = shalt.err (!%p2434_p5)
}
0x106f   :  { %2088 = dma.vmem_to_hbm [thread:$0]  %s2083_s16, 256, %s2724_s4, [#allocation4], %s2454_s20, %s2454_s20, %s2455_s21  }
0x1070   :  { %2450 = dma.done.wait [#allocation4], 256  }
0x1071   :  { %2451 = vsyncadd [#allocation4], 4294967040 }
0x1072   :  { %2092 = vsyncpa [#allocation3], 1 }
0x1073   :  { %2093 = vsyncpa [#allocation6], 1 }
0x1074   :  { %2094 = vsyncpa [#allocation4], 1 }

</bundles_post_ra>
